<compile_context>
chip_gen: v6e
topology: v6e:2x2x1
jax: 0.10.0
libtpu: 0.0.40
codegen_flags: <defaults>
</compile_context>

<pallas_src>
import functools

import jax
import jax.numpy as jnp
from jax.experimental import pallas as pl
from jax.experimental.pallas import tpu as pltpu


def _dwconv_kernel(x_ref, w_ref, o_ref, xp_ref, *, Ho, Wo, KH, KW, ph, pw):
    # x_ref : VMEM (1, H, W, Cb)        input slab, channels on lanes
    # w_ref : VMEM (KH*KW, Cb)          per-channel taps, lane-aligned
    # o_ref : VMEM (1, Ho, Wo, Cb)      output slab (lane-dense stores)
    # xp_ref: VMEM (H+2ph, W+2pw, Cb)   f32 scratch holding the zero-halo tile
    H = x_ref.shape[1]
    W = x_ref.shape[2]
    Cb = x_ref.shape[3]

    # Build the zero-halo tile entirely in VMEM (no padded copy in HBM).
    xp_ref[...] = jnp.zeros_like(xp_ref)
    xp_ref[ph:ph + H, pw:pw + W, :] = x_ref[0].astype(jnp.float32)

    # Hoist the weight slab once per grid step (a handful of vregs).
    w_all = w_ref[...].astype(jnp.float32)          # (KH*KW, Cb)

    def row_body(h, carry):
        # Accumulate one output row: (Wo, Cb) stays at a few vregs.
        acc = jnp.zeros((Wo, Cb), jnp.float32)
        for kh in range(KH):
            for kw in range(KW):
                tap = xp_ref[h + kh, pl.ds(kw, Wo), :]      # (Wo, Cb)
                acc = acc + tap * w_all[kh * KW + kw]       # lane-wide VPU FMA
        o_ref[0, h, :, :] = acc.astype(o_ref.dtype)
        return carry

    jax.lax.fori_loop(0, Ho, row_body, 0)


def depthwise_conv(x, w, *, padding=(1, 1), stride=(1, 1)):
    """x: (N, C, H, W); w: (C, KH, KW). stride must be (1, 1)."""
    assert stride == (1, 1), "only stride (1,1) implemented (matches module default)"
    N, C, H, W = x.shape
    Cw, KH, KW = w.shape
    assert Cw == C
    ph, pw = padding
    Ho = H + 2 * ph - KH + 1
    Wo = W + 2 * pw - KW + 1

    LANE = 128
    itemsize = jnp.dtype(x.dtype).itemsize
    # Channels padded up to a multiple of 128 so the lane dim is dense.
    Cp = ((C + LANE - 1) // LANE) * LANE
    # Channel block: largest multiple of 128 that divides Cp, capped at 512
    # lanes and ~2 MiB per input slab (fits scoped VMEM on v5e/v6e/v7x with
    # double-buffered in/out + the halo scratch).
    budget = 2 * 1024 * 1024
    Cb = min(Cp, 4 * LANE)
    while Cb > LANE and (Cp % Cb != 0 or H * W * Cb * itemsize > budget):
        Cb -= LANE
    # TODO(synk): for very large H*W (block > budget even at Cb=128), also
    # block rows of H with an explicit halo instead of taking full H per step.

    # Layout plumbing in the wrapper: NCHW -> NHWC, channel-pad to Cp.
    x_nhwc = jnp.transpose(x, (0, 2, 3, 1))
    if Cp != C:
        x_nhwc = jnp.pad(x_nhwc, ((0, 0), (0, 0), (0, 0), (0, Cp - C)))
    # Weights (C, KH, KW) -> (KH*KW, Cp), channels on lanes.
    w_rows = jnp.transpose(w, (1, 2, 0)).reshape(KH * KW, C)
    if Cp != C:
        w_rows = jnp.pad(w_rows, ((0, 0), (0, Cp - C)))

    grid = (N, Cp // Cb)
    kernel = functools.partial(
        _dwconv_kernel, Ho=Ho, Wo=Wo, KH=KH, KW=KW, ph=ph, pw=pw)

    out_nhwc = pl.pallas_call(
        kernel,
        out_shape=jax.ShapeDtypeStruct((N, Ho, Wo, Cp), x.dtype),
        grid=grid,
        in_specs=[
            pl.BlockSpec((1, H, W, Cb), lambda n, cb: (n, 0, 0, cb)),
            pl.BlockSpec((KH * KW, Cb), lambda n, cb: (0, cb)),
        ],
        out_specs=pl.BlockSpec((1, Ho, Wo, Cb), lambda n, cb: (n, 0, 0, cb)),
        scratch_shapes=[
            pltpu.VMEM((H + 2 * ph, W + 2 * pw, Cb), jnp.float32),
        ],
        compiler_params=pltpu.CompilerParams(
            # Both axes are fully independent -> let v7x megacore shard either.
            dimension_semantics=("parallel", "parallel"),
            vmem_limit_bytes=32 * 1024 * 1024,
        ),
    )(x_nhwc, w_rows)

    # Drop channel padding, back to NCHW.
    return jnp.transpose(out_nhwc[..., :C], (0, 3, 1, 2))


if __name__ == "__main__":
    # Small deterministic example: batch=2, channels=4, spatial=16x16, 3x3 kernel.
    key = jax.random.PRNGKey(0)
    kx, kw = jax.random.split(key)
    N, C, H, W = 2, 4, 16, 16
    KH, KW = 3, 3

    x = jax.random.normal(kx, (N, C, H, W), dtype=jnp.float32)
    # Deterministic "kaiming-ish" init for the depthwise weight (C, KH, KW).
    fan_in = KH * KW
    w = jax.random.normal(kw, (C, KH, KW), dtype=jnp.float32) * (2.0 / fan_in) ** 0.5

    out = depthwise_conv(x, w, padding=(1, 1), stride=(1, 1))
    out = jax.block_until_ready(out)

    # Sanity check against XLA's grouped conv (same semantics as nn.Conv2d groups=C).
    ref = jax.lax.conv_general_dilated(
        x, w.reshape(C, 1, KH, KW),
        window_strides=(1, 1), padding=((1, 1), (1, 1)),
        dimension_numbers=("NCHW", "OIHW", "NCHW"),
        feature_group_count=C)
    assert out.shape == (N, C, H, W)
    assert jnp.allclose(out, ref, atol=1e-5, rtol=1e-5)

    print("KERNEL_OK")
</pallas_src>

<mosaic_0001>
module attributes {stable_mosaic.version = 11 : i64} {
  func.func @_dwconv_kernel(%arg0: i32, %arg1: i32, %arg2: memref<1x16x16x128xf32, #tpu.memory_space<vmem>>, %arg3: memref<9x128xf32, #tpu.memory_space<vmem>>, %arg4: memref<1x16x16x128xf32, #tpu.memory_space<vmem>>, %arg5: memref<18x18x128xf32, #tpu.memory_space<vmem>>) attributes {dimension_semantics = [#tpu.dimension_semantics<parallel>, #tpu.dimension_semantics<parallel>], iteration_bounds = array<i64: 2, 1>, scalar_prefetch = 0 : i64, scratch_operands = 1 : i64, tpu.core_type = #tpu.core_type<tc>, window_params = [{transform_indices = @transform_0, window_bounds = array<i64: 1, 16, 16, 128>}, {transform_indices = @transform_1, window_bounds = array<i64: 9, 128>}, {transform_indices = @transform_2, window_bounds = array<i64: 1, 16, 16, 128>}]} {
    %cst = arith.constant 0.000000e+00 : f32
    %0 = vector.broadcast %cst : f32 to vector<18x18x128xf32>
    %c0 = arith.constant 0 : index
    %c0_0 = arith.constant 0 : index
    %c0_1 = arith.constant 0 : index
    %1 = vector.load %arg5[%c0, %c0_0, %c0_1] : memref<18x18x128xf32, #tpu.memory_space<vmem>>, vector<18x18x128xf32>
    tpu.vector_store %arg5[%c0, %c0_0, %c0_1], %0 {strides = array<i32>} : memref<18x18x128xf32, #tpu.memory_space<vmem>>, vector<18x18x128xf32>,
    %c0_2 = arith.constant 0 : index
    %c0_3 = arith.constant 0 : index
    %c0_4 = arith.constant 0 : index
    %c0_5 = arith.constant 0 : index
    %2 = vector.load %arg2[%c0_2, %c0_3, %c0_4, %c0_5] : memref<1x16x16x128xf32, #tpu.memory_space<vmem>>, vector<1x16x16x128xf32>
    %3 = vector.shape_cast %2 : vector<1x16x16x128xf32> to vector<16x16x128xf32>
    %c1 = arith.constant 1 : index
    %c1_6 = arith.constant 1 : index
    %c0_7 = arith.constant 0 : index
    %4 = vector.load %arg5[%c1, %c1_6, %c0_7] : memref<18x18x128xf32, #tpu.memory_space<vmem>>, vector<16x16x128xf32>
    tpu.vector_store %arg5[%c1, %c1_6, %c0_7], %3 {strides = array<i32>} : memref<18x18x128xf32, #tpu.memory_space<vmem>>, vector<16x16x128xf32>,
    %c0_8 = arith.constant 0 : index
    %c0_9 = arith.constant 0 : index
    %5 = vector.load %arg3[%c0_8, %c0_9] : memref<9x128xf32, #tpu.memory_space<vmem>>, vector<9x128xf32>
    %c0_i32 = arith.constant 0 : i32
    %c16_i32 = arith.constant 16 : i32
    %6 = arith.addi %c0_i32, %c16_i32 : i32
    %c1_i32 = arith.constant 1 : i32
    scf.for %arg6 = %c0_i32 to %6 step %c1_i32  : i32 {
      %cst_11 = arith.constant 0.000000e+00 : f32
      %7 = vector.broadcast %cst_11 : f32 to vector<16x128xf32>
      %c0_i32_12 = arith.constant 0 : i32
      %8 = arith.addi %arg6, %c0_i32_12 : i32
      %9 = arith.index_cast %8 : i32 to index
      %c0_13 = arith.constant 0 : index
      %c0_14 = arith.constant 0 : index
      %10 = vector.load %arg5[%9, %c0_13, %c0_14] : memref<18x18x128xf32, #tpu.memory_space<vmem>>, vector<1x16x128xf32>
      %11 = vector.shape_cast %10 : vector<1x16x128xf32> to vector<16x128xf32>
      %12 = vector.extract_strided_slice %5 {offsets = [0, 0], sizes = [1, 128], strides = [1, 1]} : vector<9x128xf32> to vector<1x128xf32>
      %13 = vector.shape_cast %12 : vector<1x128xf32> to vector<128xf32>
      %14 = vector.shape_cast %13 : vector<128xf32> to vector<1x128xf32>
      %15 = vector.broadcast %14 : vector<1x128xf32> to vector<16x128xf32>
      %16 = arith.mulf %11, %15 : vector<16x128xf32>
      %17 = arith.addf %7, %16 : vector<16x128xf32>
      %c0_i32_15 = arith.constant 0 : i32
      %18 = arith.addi %arg6, %c0_i32_15 : i32
      %19 = arith.index_cast %18 : i32 to index
      %c1_16 = arith.constant 1 : index
      %c0_17 = arith.constant 0 : index
      %20 = vector.load %arg5[%19, %c1_16, %c0_17] : memref<18x18x128xf32, #tpu.memory_space<vmem>>, vector<1x16x128xf32>
      %21 = vector.shape_cast %20 : vector<1x16x128xf32> to vector<16x128xf32>
      %22 = vector.extract_strided_slice %5 {offsets = [1, 0], sizes = [1, 128], strides = [1, 1]} : vector<9x128xf32> to vector<1x128xf32>
      %23 = vector.shape_cast %22 : vector<1x128xf32> to vector<128xf32>
      %24 = vector.shape_cast %23 : vector<128xf32> to vector<1x128xf32>
      %25 = vector.broadcast %24 : vector<1x128xf32> to vector<16x128xf32>
      %26 = arith.mulf %21, %25 : vector<16x128xf32>
      %27 = arith.addf %17, %26 : vector<16x128xf32>
      %c0_i32_18 = arith.constant 0 : i32
      %28 = arith.addi %arg6, %c0_i32_18 : i32
      %29 = arith.index_cast %28 : i32 to index
      %c2 = arith.constant 2 : index
      %c0_19 = arith.constant 0 : index
      %30 = vector.load %arg5[%29, %c2, %c0_19] : memref<18x18x128xf32, #tpu.memory_space<vmem>>, vector<1x16x128xf32>
      %31 = vector.shape_cast %30 : vector<1x16x128xf32> to vector<16x128xf32>
      %32 = vector.extract_strided_slice %5 {offsets = [2, 0], sizes = [1, 128], strides = [1, 1]} : vector<9x128xf32> to vector<1x128xf32>
      %33 = vector.shape_cast %32 : vector<1x128xf32> to vector<128xf32>
      %34 = vector.shape_cast %33 : vector<128xf32> to vector<1x128xf32>
      %35 = vector.broadcast %34 : vector<1x128xf32> to vector<16x128xf32>
      %36 = arith.mulf %31, %35 : vector<16x128xf32>
      %37 = arith.addf %27, %36 : vector<16x128xf32>
      %c1_i32_20 = arith.constant 1 : i32
      %38 = arith.addi %arg6, %c1_i32_20 : i32
      %39 = arith.index_cast %38 : i32 to index
      %c0_21 = arith.constant 0 : index
      %c0_22 = arith.constant 0 : index
      %40 = vector.load %arg5[%39, %c0_21, %c0_22] : memref<18x18x128xf32, #tpu.memory_space<vmem>>, vector<1x16x128xf32>
      %41 = vector.shape_cast %40 : vector<1x16x128xf32> to vector<16x128xf32>
      %42 = vector.extract_strided_slice %5 {offsets = [3, 0], sizes = [1, 128], strides = [1, 1]} : vector<9x128xf32> to vector<1x128xf32>
      %43 = vector.shape_cast %42 : vector<1x128xf32> to vector<128xf32>
      %44 = vector.shape_cast %43 : vector<128xf32> to vector<1x128xf32>
      %45 = vector.broadcast %44 : vector<1x128xf32> to vector<16x128xf32>
      %46 = arith.mulf %41, %45 : vector<16x128xf32>
      %47 = arith.addf %37, %46 : vector<16x128xf32>
      %c1_i32_23 = arith.constant 1 : i32
      %48 = arith.addi %arg6, %c1_i32_23 : i32
      %49 = arith.index_cast %48 : i32 to index
      %c1_24 = arith.constant 1 : index
      %c0_25 = arith.constant 0 : index
      %50 = vector.load %arg5[%49, %c1_24, %c0_25] : memref<18x18x128xf32, #tpu.memory_space<vmem>>, vector<1x16x128xf32>
      %51 = vector.shape_cast %50 : vector<1x16x128xf32> to vector<16x128xf32>
      %52 = vector.extract_strided_slice %5 {offsets = [4, 0], sizes = [1, 128], strides = [1, 1]} : vector<9x128xf32> to vector<1x128xf32>
      %53 = vector.shape_cast %52 : vector<1x128xf32> to vector<128xf32>
      %54 = vector.shape_cast %53 : vector<128xf32> to vector<1x128xf32>
      %55 = vector.broadcast %54 : vector<1x128xf32> to vector<16x128xf32>
      %56 = arith.mulf %51, %55 : vector<16x128xf32>
      %57 = arith.addf %47, %56 : vector<16x128xf32>
      %c1_i32_26 = arith.constant 1 : i32
      %58 = arith.addi %arg6, %c1_i32_26 : i32
      %59 = arith.index_cast %58 : i32 to index
      %c2_27 = arith.constant 2 : index
      %c0_28 = arith.constant 0 : index
      %60 = vector.load %arg5[%59, %c2_27, %c0_28] : memref<18x18x128xf32, #tpu.memory_space<vmem>>, vector<1x16x128xf32>
      %61 = vector.shape_cast %60 : vector<1x16x128xf32> to vector<16x128xf32>
      %62 = vector.extract_strided_slice %5 {offsets = [5, 0], sizes = [1, 128], strides = [1, 1]} : vector<9x128xf32> to vector<1x128xf32>
      %63 = vector.shape_cast %62 : vector<1x128xf32> to vector<128xf32>
      %64 = vector.shape_cast %63 : vector<128xf32> to vector<1x128xf32>
      %65 = vector.broadcast %64 : vector<1x128xf32> to vector<16x128xf32>
      %66 = arith.mulf %61, %65 : vector<16x128xf32>
      %67 = arith.addf %57, %66 : vector<16x128xf32>
      %c2_i32 = arith.constant 2 : i32
      %68 = arith.addi %arg6, %c2_i32 : i32
      %69 = arith.index_cast %68 : i32 to index
      %c0_29 = arith.constant 0 : index
      %c0_30 = arith.constant 0 : index
      %70 = vector.load %arg5[%69, %c0_29, %c0_30] : memref<18x18x128xf32, #tpu.memory_space<vmem>>, vector<1x16x128xf32>
      %71 = vector.shape_cast %70 : vector<1x16x128xf32> to vector<16x128xf32>
      %72 = vector.extract_strided_slice %5 {offsets = [6, 0], sizes = [1, 128], strides = [1, 1]} : vector<9x128xf32> to vector<1x128xf32>
      %73 = vector.shape_cast %72 : vector<1x128xf32> to vector<128xf32>
      %74 = vector.shape_cast %73 : vector<128xf32> to vector<1x128xf32>
      %75 = vector.broadcast %74 : vector<1x128xf32> to vector<16x128xf32>
      %76 = arith.mulf %71, %75 : vector<16x128xf32>
      %77 = arith.addf %67, %76 : vector<16x128xf32>
      %c2_i32_31 = arith.constant 2 : i32
      %78 = arith.addi %arg6, %c2_i32_31 : i32
      %79 = arith.index_cast %78 : i32 to index
      %c1_32 = arith.constant 1 : index
      %c0_33 = arith.constant 0 : index
      %80 = vector.load %arg5[%79, %c1_32, %c0_33] : memref<18x18x128xf32, #tpu.memory_space<vmem>>, vector<1x16x128xf32>
      %81 = vector.shape_cast %80 : vector<1x16x128xf32> to vector<16x128xf32>
      %82 = vector.extract_strided_slice %5 {offsets = [7, 0], sizes = [1, 128], strides = [1, 1]} : vector<9x128xf32> to vector<1x128xf32>
      %83 = vector.shape_cast %82 : vector<1x128xf32> to vector<128xf32>
      %84 = vector.shape_cast %83 : vector<128xf32> to vector<1x128xf32>
      %85 = vector.broadcast %84 : vector<1x128xf32> to vector<16x128xf32>
      %86 = arith.mulf %81, %85 : vector<16x128xf32>
      %87 = arith.addf %77, %86 : vector<16x128xf32>
      %c2_i32_34 = arith.constant 2 : i32
      %88 = arith.addi %arg6, %c2_i32_34 : i32
      %89 = arith.index_cast %88 : i32 to index
      %c2_35 = arith.constant 2 : index
      %c0_36 = arith.constant 0 : index
      %90 = vector.load %arg5[%89, %c2_35, %c0_36] : memref<18x18x128xf32, #tpu.memory_space<vmem>>, vector<1x16x128xf32>
      %91 = vector.shape_cast %90 : vector<1x16x128xf32> to vector<16x128xf32>
      %92 = vector.extract_strided_slice %5 {offsets = [8, 0], sizes = [1, 128], strides = [1, 1]} : vector<9x128xf32> to vector<1x128xf32>
      %93 = vector.shape_cast %92 : vector<1x128xf32> to vector<128xf32>
      %94 = vector.shape_cast %93 : vector<128xf32> to vector<1x128xf32>
      %95 = vector.broadcast %94 : vector<1x128xf32> to vector<16x128xf32>
      %96 = arith.mulf %91, %95 : vector<16x128xf32>
      %97 = arith.addf %87, %96 : vector<16x128xf32>
      %c0_37 = arith.constant 0 : index
      %98 = arith.index_cast %arg6 : i32 to index
      %c0_38 = arith.constant 0 : index
      %c0_39 = arith.constant 0 : index
      %99 = vector.load %arg4[%c0_37, %98, %c0_38, %c0_39] : memref<1x16x16x128xf32, #tpu.memory_space<vmem>>, vector<1x1x16x128xf32>
      %100 = vector.shape_cast %99 : vector<1x1x16x128xf32> to vector<16x128xf32>
      %101 = vector.shape_cast %97 : vector<16x128xf32> to vector<1x1x16x128xf32>
      tpu.vector_store %arg4[%c0_37, %98, %c0_38, %c0_39], %101 {strides = array<i32>} : memref<1x16x16x128xf32, #tpu.memory_space<vmem>>, vector<1x1x16x128xf32>,
    }
    %c16_i32_10 = arith.constant 16 : i32
    return
  }
  func.func @transform_0(%arg0: i32, %arg1: i32) -> (i32, i32, i32, i32) {
    %c0_i32 = arith.constant 0 : i32
    %c0_i32_0 = arith.constant 0 : i32
    %c0_i32_1 = arith.constant 0 : i32
    return %arg0, %c0_i32, %c0_i32_0, %arg1 : i32, i32, i32, i32
  }
  func.func @transform_1(%arg0: i32, %arg1: i32) -> (i32, i32) {
    %c0_i32 = arith.constant 0 : i32
    %c0_i32_0 = arith.constant 0 : i32
    return %c0_i32, %arg1 : i32, i32
  }
  func.func @transform_2(%arg0: i32, %arg1: i32) -> (i32, i32, i32, i32) {
    %c0_i32 = arith.constant 0 : i32
    %c0_i32_0 = arith.constant 0 : i32
    %c0_i32_1 = arith.constant 0 : i32
    return %arg0, %c0_i32, %c0_i32_0, %arg1 : i32, i32, i32, i32
  }
}

</mosaic_0001>

<bundles_post_ra>
// kernel: tpu_custom_call.1
= control target key start
LH: loop header
LB: loop body
LE: loop exit
PB: predicated region body
PF: predicated region fallthrough
CT: control target
= control target key end

     0   :  { %7 = vsyncpa [#allocation4], 0  ;;  %s1120_s0 = inlined_call_operand.hbm [shape: f32[2,16,16,128], index: 0, kind: input, shape index: {}]   ;;  %s1121_s1 = inlined_call_operand.hbm [shape: f32[9,128], index: 1, kind: input, shape index: {}]   ;;  %s1122_s2 = inlined_call_operand.hbm [shape: f32[2,16,16,128], index: 2, kind: output, shape index: {}]  }
   0x1   :  { %9 = vsyncpa [#allocation4 + $0x1], 0 }
   0x2   :  { %10 = vsyncpa [#allocation7], 0 }
   0x3   :  { %11 = vsyncpa [#allocation5], 0 }
   0x4   :  { %13 = vsyncpa [#allocation5 + $0x1], 0  ;;  %s847_s9 = smov 0   ;;  %s849_s10 = smov 0  }
   0x5   :  { %s851_s11 = smov 0   ;;  %s853_s12 = smov 0  }
   0x6   :  { %s855_s13 = smov 0   ;;  %s857_s14 = smov 0  }
   0x7 LB: > { %s557_s15 = sadd.s32 4294967295, %s818_s14   ;;  %s558_s16 = sadd.s32 4294967294, %s818_s14   ;;  %s818_s14 = sphi %s857_s14, %s19_s14   ;;  %s814_s13 = sphi %s855_s13, %s1142_s13   ;;  %s810_s12 = sphi %s853_s12, %s1141_s12   ;;  %s806_s11 = sphi %s851_s11, %s1140_s11   ;;  %s802_s10 = sphi %s849_s10, %s1139_s10   ;;  %s798_s9 = sphi %s847_s9, %s1138_s9  }
   0x8   : > { %p53_p0 = scmp.ne.s32.totalorder %s802_s10, %s798_s9  ;;  %p881_p1 = scmp.eq.s32.totalorder %s557_s15, 0 }
   0x9   : > { %p885_p2 = scmp.eq.s32.totalorder %s557_s15, 1  ;;  %p111_p3 = scmp.eq.s32.totalorder %s558_s16, 1 }
   0xa   : > { %p891_p4 = por %p881_p1, %p53_p0  ;;  %p559_p5 = scmp.ge.s32.totalorder %s818_s14, 1 }
   0xb   : > { %p896_p6 = por %p111_p3, %p53_p0  ;;  %p118_p7 = scmp.lt.s32.totalorder %s818_s14, 3 }
   0xc   : > { %s1127_s19 = scalar_select %p891_p4, 1, 0 }
   0xd   : > { %s1128_s20 = scalar_select %p896_p6, 1, 0 }
   0xe   : > { %p901_p8 = pnand %p559_p5, %p118_p7  ;;  %s824_s22 = smov [#allocation6]  }
   0xf   : > { %s132_s23 = sshll.u32 %s824_s22, 4  ;;  %s31_s25 = sadd.s32 1, %s814_s13  ;;  %s133_s23 = int_to_ptr.vmem [resolvable:$true] %s132_s23 }
  0x10   : > { %p598_p9 = pneg %p901_p8  ;;  %s687_s26 = scalar_lea.vmem %s133_s23, 256 }
  0x11   : > { %p688_p13 = scmp.ne.s32.totalorder %s133_s23, %s687_s26  ;;  %p695_p5 = scmp.lt.s32.totalorder %s133_s23, %s133_s23 }
  0x12   : > { %p910_p11 = pnand %p598_p9, %p881_p1  ;;  %p696_p7 = scmp.lt.s32.totalorder %s687_s26, %s687_s26 }
  0x14   : > { %p678_p12 = pneg %p910_p11  ;;  %p697_p6 = por %p696_p7, %p695_p5 }
  0x16   : > { %p690_p0 = pnand %p688_p13, %p678_p12 }
  0x18   : > { %p691_p3 = pneg %p690_p0 }
  0x1a   : > { %p698_p4 = pnand %p697_p6, %p691_p3 }
  0x1c   : > { %701 = shalt.err (!%p698_p4)
}
  0x1d   : > { %s1124_s27 = smov 128   ;;  %s826_s28 = smov 8  }
  0x1e   : > { %601 = dma.hbm_to_vmem [thread:$0]  (!%p910_p11), %s1121_s1, 256, %s133_s23, [#allocation7], %s1124_s27, %s1124_s27, %s826_s28  }
  0x1f   : > { %p33_p4 = scmp.ge.s32.totalorder %s31_s25, 2  ;;  %s40_s3 = sadd.s32 1, %s806_s11 }
  0x20   : > { %p47_p6 = scmp.ne.s32.totalorder %s806_s11, %s802_s10  ;;  %p48_p9 = scmp.eq.s32.totalorder %s818_s14, 0 }
  0x21   : > { %s1144_s25 = smov (%p33_p4, %s31_s25), 0  ;;  %p611_p0 = scmp.lt.s32.totalorder %s818_s14, 2 }
  0x22   : > { %p931_p12 = por %p48_p9, %p47_p6  ;;  %p937_p13 = por %p885_p2, %p47_p6 }
  0x23   : > { %s35_s6 = ssub.s32 %s814_s13, %s1144_s25  ;;  %s146_s7 = sand.u32 1, %s806_s11  }
  0x24   : > { %p38_p11 = scmp.eq.s32.totalorder %s35_s6, 0  ;;  %s562_s8 = sshll.u32 %s146_s7, 8 }
  0x25   : > { %s588_s16 = sshll.u32 %s814_s13, 12  ;;  %s150_s26 = scalar_lea.vmem [#allocation3], %s562_s8 }
  0x26   : > { %s946_s15 = scalar_select %p38_p11, %s806_s11, %s40_s3  }
  0x27   : > { %s157_s24 = scalar_lea.hbm %s1120_s0, %s588_s16  ;;  %s158_s29 = sshll.u32 %s150_s26, 4  ;;  %s159_s29 = int_to_ptr.vmem [resolvable:$true] %s158_s29 }
  0x28   : > { %p954_p2 = pnand %p611_p0, %p931_p12  ;;  %s147_s30 = scalar_lea.sflag [#allocation4], %s146_s7 }
  0x29   : > { %s715_s6 = scalar_lea.vmem %s159_s29, 4096  ;;  %s827_s3 = smov [#allocation3]  }
  0x2a   : > { %p704_p3 = pneg %p954_p2  ;;  %p716_p5 = scmp.ne.s32.totalorder %s159_s29, %s715_s6 }
  0x2b   : > { %s720_s27 = sshll.u32 %s827_s3, 4  ;;  %s721_s27 = int_to_ptr.vmem [resolvable:$false] %s720_s27 }
  0x2c   : > { %p718_p7 = pnand %p716_p5, %p704_p3  ;;  %s722_s16 = scalar_lea.vmem %s721_s27, 8192 }
  0x2d   : > { %p723_p6 = scmp.lt.s32.totalorder %s159_s29, %s721_s27  ;;  %p724_p9 = scmp.lt.s32.totalorder %s722_s16, %s715_s6 }
  0x2e   : > { %p719_p4 = pneg %p718_p7 }
  0x2f   : > { %p725_p11 = por %p724_p9, %p723_p6 }
  0x31   : > { %p726_p10 = pnand %p725_p11, %p719_p4 }
  0x33   : > { %729 = shalt.err (!%p726_p10)
}
  0x34   : > { %s1134_s4 = smov 128   ;;  %170 = sbr.rel (%p901_p8) target bundleno = 145 (0x91), region = 28 }
  0x35   : > { %605 = dma.hbm_to_vmem [thread:$0]  (!%p954_p2), %s157_s24, 4096, %s159_s29, %s147_s30, %s1134_s4, %s1134_s4, %s826_s28  }
  0x36   : > { %s968_s7 = sand.u32 (!%p901_p8), 1, %s802_s10   ;;  %p1135_p10 = scmp.ne.s32.totalorder (!%p901_p8), %s1127_s19, 0 }
  0x37   : > { %s566_s27 = sshll.u32 (!%p901_p8), %s968_s7, 8  ;;  %s173_s8 = scalar_lea.sflag (!%p901_p8), [#allocation4], %s968_s7 }
  0x38   : > { %s974_s22 = scalar_lea.vmem (!%p901_p8), [#allocation3], %s566_s27 }
  0x39   : > { %785 = dma.done.wait (%p1135_p10), %s173_s8, 4096  }
  0x3a   : > { %787 = vsyncadd (%p1135_p10), %s173_s8, 4294963200 }
  0x3b   : > { %789 = dma.done.wait (%p881_p1), [#allocation7], 256  }
  0x3c   : > { %791 = vsyncadd (%p881_p1), [#allocation7], 4294967040  ;;  %v828_v0 = vmov 0.0   ;;  %v984_v1 = vld [vmem:[#allocation6] sm:$0xff]  ;;  %v986_v2 = vld [vmem:[#allocation6 + $0x8] ss:$0 sm:$0xff] }
  0x3d   : > { %204 = vst [vmem:[#allocation2 + $0x18] sm:$0xff] %v828_v0  ;;  %201 = vst [vmem:[#allocation2] sm:$0xff] %v828_v0  ;;  %v255_v3 = vld [vmem:[%s974_s22] sm:$0xff]  ;;  %v256_v4 = vld [vmem:[%s974_s22 + $0x8] sm:$0xff]  ;;  %s1022_s17 = scalar_lea.vmem [#allocation8], %s566_s27  ;;  %s1024_s19 = smov 0  }
  0x3e   : > { %202 = vst [vmem:[#allocation2 + $0x8] sm:$0xff] %v828_v0  ;;  %203 = vst [vmem:[#allocation2 + $0x10] sm:$0x3] %v828_v0  ;;  %v257_v5 = vld [vmem:[%s974_s22 + $0x10] sm:$0xff]  ;;  %v258_v6 = vld [vmem:[%s974_s22 + $0x18] sm:$0xff] }
  0x3f   : > { %205 = vst [vmem:[#allocation2 + $0x20] sm:$0xff] %v828_v0  ;;  %206 = vst [vmem:[#allocation2 + $0x28] sm:$0x3] %v828_v0  ;;  %v259_v7 = vld [vmem:[%s974_s22 + $0x20] sm:$0xff]  ;;  %v260_v8 = vld [vmem:[%s974_s22 + $0x28] sm:$0xff] }
  0x40   : > { %207 = vst [vmem:[#allocation2 + $0x30] sm:$0xff] %v828_v0  ;;  %208 = vst [vmem:[#allocation2 + $0x38] sm:$0xff] %v828_v0  ;;  %v261_v9 = vld [vmem:[%s974_s22 + $0x30] sm:$0xff]  ;;  %v262_v10 = vld [vmem:[%s974_s22 + $0x38] sm:$0xff] }
  0x41   : > { %209 = vst [vmem:[#allocation2 + $0x40] sm:$0x3] %v828_v0  ;;  %210 = vst [vmem:[#allocation2 + $0x48] sm:$0xff] %v828_v0  ;;  %v263_v11 = vld [vmem:[%s974_s22 + $0x40] sm:$0xff]  ;;  %v264_v12 = vld [vmem:[%s974_s22 + $0x48] sm:$0xff] }
  0x42   : > { %211 = vst [vmem:[#allocation2 + $0x50] sm:$0xff] %v828_v0  ;;  %212 = vst [vmem:[#allocation2 + $0x58] sm:$0x3] %v828_v0  ;;  %v265_v13 = vld [vmem:[%s974_s22 + $0x50] sm:$0xff]  ;;  %v266_v14 = vld [vmem:[%s974_s22 + $0x58] sm:$0xff] }
  0x43   : > { %213 = vst [vmem:[#allocation2 + $0x60] sm:$0xff] %v828_v0  ;;  %214 = vst [vmem:[#allocation2 + $0x68] sm:$0xff] %v828_v0  ;;  %v267_v15 = vld [vmem:[%s974_s22 + $0x60] sm:$0xff]  ;;  %v268_v16 = vld [vmem:[%s974_s22 + $0x68] sm:$0xff] }
  0x44   : > { %215 = vst [vmem:[#allocation2 + $0x70] sm:$0x3] %v828_v0  ;;  %216 = vst [vmem:[#allocation2 + $0x78] sm:$0xff] %v828_v0  ;;  %v269_v17 = vld [vmem:[%s974_s22 + $0x70] sm:$0xff]  ;;  %v270_v18 = vld [vmem:[%s974_s22 + $0x78] sm:$0xff] }
  0x45   : > { %217 = vst [vmem:[#allocation2 + $0x80] sm:$0xff] %v828_v0  ;;  %218 = vst [vmem:[#allocation2 + $0x88] sm:$0x3] %v828_v0  ;;  %v271_v19 = vld [vmem:[%s974_s22 + $0x80] sm:$0xff]  ;;  %v272_v20 = vld [vmem:[%s974_s22 + $0x88] sm:$0xff] }
  0x46   : > { %219 = vst [vmem:[#allocation2 + $0x90] sm:$0xff] %v828_v0  ;;  %220 = vst [vmem:[#allocation2 + $0x98] sm:$0xff] %v828_v0  ;;  %v273_v21 = vld [vmem:[%s974_s22 + $0x90] sm:$0xff]  ;;  %v274_v22 = vld [vmem:[%s974_s22 + $0x98] sm:$0xff] }
  0x47   : > { %221 = vst [vmem:[#allocation2 + $0xa0] sm:$0x3] %v828_v0  ;;  %222 = vst [vmem:[#allocation2 + $0xa8] sm:$0xff] %v828_v0  ;;  %v275_v23 = vld [vmem:[%s974_s22 + $0xa0] sm:$0xff]  ;;  %v276_v24 = vld [vmem:[%s974_s22 + $0xa8] sm:$0xff] }
  0x48   : > { %223 = vst [vmem:[#allocation2 + $0xb0] sm:$0xff] %v828_v0  ;;  %224 = vst [vmem:[#allocation2 + $0xb8] sm:$0x3] %v828_v0  ;;  %v277_v25 = vld [vmem:[%s974_s22 + $0xb0] sm:$0xff]  ;;  %v278_v26 = vld [vmem:[%s974_s22 + $0xb8] sm:$0xff] }
  0x49   : > { %225 = vst [vmem:[#allocation2 + $0xc0] sm:$0xff] %v828_v0  ;;  %226 = vst [vmem:[#allocation2 + $0xc8] sm:$0xff] %v828_v0  ;;  %v279_v27 = vld [vmem:[%s974_s22 + $0xc0] sm:$0xff]  ;;  %v280_v28 = vld [vmem:[%s974_s22 + $0xc8] sm:$0xff] }
  0x4a   : > { %227 = vst [vmem:[#allocation2 + $0xd0] sm:$0x3] %v828_v0  ;;  %228 = vst [vmem:[#allocation2 + $0xd8] sm:$0xff] %v828_v0  ;;  %v281_v29 = vld [vmem:[%s974_s22 + $0xd0] sm:$0xff]  ;;  %v282_v30 = vld [vmem:[%s974_s22 + $0xd8] sm:$0xff] }
  0x4b   : > { %229 = vst [vmem:[#allocation2 + $0xe0] sm:$0xff] %v828_v0  ;;  %230 = vst [vmem:[#allocation2 + $0xe8] sm:$0x3] %v828_v0  ;;  %v283_v31 = vld [vmem:[%s974_s22 + $0xe0] sm:$0xff]  ;;  %v284_v32 = vld [vmem:[%s974_s22 + $0xe8] sm:$0xff] }
  0x4c   : > { %231 = vst [vmem:[#allocation2 + $0xf0] sm:$0xff] %v828_v0  ;;  %232 = vst [vmem:[#allocation2 + $0xf8] sm:$0xff] %v828_v0  ;;  %v285_v33 = vld [vmem:[%s974_s22 + $0xf0] sm:$0xff]  ;;  %v286_v34 = vld [vmem:[%s974_s22 + $0xf8] sm:$0xff] }
  0x4d   : > { %233 = vst [vmem:[#allocation2 + $0x100] sm:$0x3] %v828_v0  ;;  %234 = vst [vmem:[#allocation2 + $0x108] sm:$0xff] %v828_v0 }
  0x4e   : > { %235 = vst [vmem:[#allocation2 + $0x110] sm:$0xff] %v828_v0  ;;  %236 = vst [vmem:[#allocation2 + $0x118] sm:$0x3] %v828_v0 }
  0x4f   : > { %237 = vst [vmem:[#allocation2 + $0x120] sm:$0xff] %v828_v0  ;;  %238 = vst [vmem:[#allocation2 + $0x128] sm:$0xff] %v828_v0 }
  0x50   : > { %239 = vst [vmem:[#allocation2 + $0x130] sm:$0x3] %v828_v0  ;;  %240 = vst [vmem:[#allocation2 + $0x138] sm:$0xff] %v828_v0 }
  0x51   : > { %241 = vst [vmem:[#allocation2 + $0x140] sm:$0xff] %v828_v0  ;;  %242 = vst [vmem:[#allocation2 + $0x148] sm:$0x3] %v828_v0 }
  0x52   : > { %243 = vst [vmem:[#allocation2 + $0x150] sm:$0xff] %v828_v0  ;;  %244 = vst [vmem:[#allocation2 + $0x158] sm:$0xff] %v828_v0 }
  0x53   : > { %245 = vst [vmem:[#allocation2 + $0x160] sm:$0x3] %v828_v0  ;;  %246 = vst [vmem:[#allocation2 + $0x168] sm:$0xff] %v828_v0 }
  0x54   : > { %247 = vst [vmem:[#allocation2 + $0x170] sm:$0xff] %v828_v0  ;;  %248 = vst [vmem:[#allocation2 + $0x178] sm:$0x3] %v828_v0 }
  0x55   : > { %249 = vst [vmem:[#allocation2 + $0x180] sm:$0xff] %v828_v0  ;;  %250 = vst [vmem:[#allocation2 + $0x188] sm:$0xff] %v828_v0 }
  0x56   : > { %251 = vst [vmem:[#allocation2 + $0x190] sm:$0x3] %v828_v0  ;;  %252 = vst [vmem:[#allocation2 + $0x198] sm:$0xff] %v828_v0 }
  0x57   : > { %253 = vst [vmem:[#allocation2 + $0x1a0] sm:$0xff] %v828_v0  ;;  %254 = vst [vmem:[#allocation2 + $0x1a8] sm:$0x3] %v828_v0 }
  0x58   : > { %288 = vst [vmem:[#allocation2 + $0x19] sm:$0xff] %v255_v3  ;;  %289 = vst [vmem:[#allocation2 + $0x21] sm:$0xff] %v256_v4 }
  0x59   : > { %290 = vst [vmem:[#allocation2 + $0x31] sm:$0xff] %v257_v5  ;;  %291 = vst [vmem:[#allocation2 + $0x39] sm:$0xff] %v258_v6 }
  0x5a   : > { %292 = vst [vmem:[#allocation2 + $0x49] sm:$0xff] %v259_v7  ;;  %293 = vst [vmem:[#allocation2 + $0x51] sm:$0xff] %v260_v8 }
  0x5b   : > { %294 = vst [vmem:[#allocation2 + $0x61] sm:$0xff] %v261_v9  ;;  %295 = vst [vmem:[#allocation2 + $0x69] sm:$0xff] %v262_v10 }
  0x5c   : > { %296 = vst [vmem:[#allocation2 + $0x79] sm:$0xff] %v263_v11  ;;  %297 = vst [vmem:[#allocation2 + $0x81] sm:$0xff] %v264_v12 }
  0x5d   : > { %298 = vst [vmem:[#allocation2 + $0x91] sm:$0xff] %v265_v13  ;;  %299 = vst [vmem:[#allocation2 + $0x99] sm:$0xff] %v266_v14 }
  0x5e   : > { %300 = vst [vmem:[#allocation2 + $0xa9] sm:$0xff] %v267_v15  ;;  %301 = vst [vmem:[#allocation2 + $0xb1] sm:$0xff] %v268_v16 }
  0x5f   : > { %302 = vst [vmem:[#allocation2 + $0xc1] sm:$0xff] %v269_v17  ;;  %303 = vst [vmem:[#allocation2 + $0xc9] sm:$0xff] %v270_v18 }
  0x60   : > { %304 = vst [vmem:[#allocation2 + $0xd9] sm:$0xff] %v271_v19  ;;  %305 = vst [vmem:[#allocation2 + $0xe1] sm:$0xff] %v272_v20 }
  0x61   : > { %306 = vst [vmem:[#allocation2 + $0xf1] sm:$0xff] %v273_v21  ;;  %307 = vst [vmem:[#allocation2 + $0xf9] sm:$0xff] %v274_v22 }
  0x62   : > { %308 = vst [vmem:[#allocation2 + $0x109] sm:$0xff] %v275_v23  ;;  %309 = vst [vmem:[#allocation2 + $0x111] sm:$0xff] %v276_v24 }
  0x63   : > { %310 = vst [vmem:[#allocation2 + $0x121] sm:$0xff] %v277_v25  ;;  %311 = vst [vmem:[#allocation2 + $0x129] sm:$0xff] %v278_v26 }
  0x64   : > { %312 = vst [vmem:[#allocation2 + $0x139] sm:$0xff] %v279_v27  ;;  %313 = vst [vmem:[#allocation2 + $0x141] sm:$0xff] %v280_v28 }
  0x65   : > { %314 = vst [vmem:[#allocation2 + $0x151] sm:$0xff] %v281_v29  ;;  %315 = vst [vmem:[#allocation2 + $0x159] sm:$0xff] %v282_v30 }
  0x66   : > { %316 = vst [vmem:[#allocation2 + $0x169] sm:$0xff] %v283_v31  ;;  %317 = vst [vmem:[#allocation2 + $0x171] sm:$0xff] %v284_v32 }
  0x67   : > { %318 = vst [vmem:[#allocation2 + $0x181] sm:$0xff] %v285_v33  ;;  %319 = vst [vmem:[#allocation2 + $0x189] sm:$0xff] %v286_v34 }
  0x68 LB: >> { %v332_v35 = vlaneseq  ;;  %s328_s21 = smul.u32 24, %s822_s19  ;;  %s582_s23 = sshll.u32 %s822_s19, 4  ;;  %s822_s19 = sphi %s1024_s19, %s327_s19  }
  0x69   : >> { %s427_s24 = scalar_lea.vmem %s1022_s17, %s582_s23 [#allocation8]  ;;  %s327_s19 = sadd.s32 1, %s822_s19  }
  0x6a   : >> { %v333_v36 = vshrl.u32 %v332_v35, 7  ;;  %s1030_s28 = scalar_lea.vmem [#allocation2], %s328_s21  ;;  %p324_p1 = scmp.ge.s32.totalorder %s327_s19, 16  }
  0x6b   : > { %s589_s26 = sshll.u32 (%p324_p1), %s810_s12, 12  ;;  %s445_s6 = sshll.u32 (%p324_p1), %s1022_s17, 4  ;;  %s1072_s6 = int_to_ptr.vmem [resolvable:$true] %s445_s6 }
  0x6c   : >> { %v334_v37 = vsub.s32 0, %v333_v36  ;;  %v344_v38 = vsub.s32 1, %v333_v36  ;;  %v354_v39 = vsub.s32 2, %v333_v36  ;;  %v367_v40 = vsub.s32 3, %v333_v36  ;;  %s1069_s30 = scalar_lea.hbm (%p324_p1), %s1122_s2, %s589_s26  ;;  %s431_s3 = scalar_lea.sflag (%p324_p1), [#allocation5], %s968_s7 }
  0x6d   : >> { %v377_v44 = vsub.s32 4, %v333_v36  ;;  %v387_v45 = vsub.s32 5, %v333_v36  ;;  %v400_v51 = vsub.s32 6, %v333_v36  ;;  %v410_v61 = vsub.s32 7, %v333_v36  ;;  %s730_s16 = scalar_lea.vmem (%p324_p1), %s1072_s6, 4096  ;;  %s829_s4 = smov (%p324_p1), [#allocation8]  }
  0x6e   : >> { %v330_v41 = vld [vmem:[%s1030_s28] sm:$0xff]  ;;  %v335_v46 = vrot.slane %v984_v1, %v334_v37  ;;  %v345_v47 = vrot.slane %v984_v1, %v344_v38  ;;  %v355_v48 = vrot.slane %v984_v1, %v354_v39  ;;  %v368_v49 = vrot.slane %v984_v1, %v367_v40  ;;  %v569_v50 = vld [vmem:[%s1030_s28 + $0x18] sm:$0xff]  ;;  %v331_v56 = vld [vmem:[%s1030_s28 + $0x8] sm:$0xff]  ;;  %p731_p8 = scmp.ne.s32.totalorder (%p324_p1), %s1072_s6, %s730_s16  ;;  %s734_s27 = sshll.u32 (%p324_p1), %s829_s4, 4  ;;  %s735_s27 = int_to_ptr.vmem [resolvable:$false] %s734_s27 }
  0x6f   : >> { %v340_v42 = vld [vmem:[%s1030_s28 + $0x1] sm:$0xff]  ;;  %v378_v55 = vrot.slane %v984_v1, %v377_v44  ;;  %v341_v57 = vld [vmem:[%s1030_s28 + $0x9] sm:$0xff]  ;;  %v571_v59 = vld [vmem:[%s1030_s28 + $0x19] sm:$0xff]  ;;  %v388_v60 = vrot.slane %v984_v1, %v387_v45  ;;  %v401_v6 = vrot.slane %v984_v1, %v400_v51  ;;  %v411_v17 = vrot.slane %v984_v1, %v410_v61  ;;  %s736_s12 = scalar_lea.vmem (%p324_p1), %s735_s27, 8192  ;;  %p737_p2 = scmp.lt.s32.totalorder (%p324_p1), %s1072_s6, %s735_s27 }
  0x70   : >> { %v350_v43 = vld [vmem:[%s1030_s28 + $0x2] sm:$0xff]  ;;  %v336_v52 = vmul.f32 %v335_v46, %v330_v41  ;;  %v346_v53 = vmul.f32 %v345_v47, %v340_v42  ;;  %v351_v58 = vld [vmem:[%s1030_s28 + $0xa] sm:$0xff]  ;;  %v369_v0 = vmul.f32 %v569_v50, %v368_v49  ;;  %v573_v3 = vld [vmem:[%s1030_s28 + $0x1a] sm:$0xff]  ;;  %v337_v4 = vmul.f32 %v335_v46, %v331_v56  ;;  %p732_p12 = pnand (%p324_p1), %p731_p8, %p937_p13  ;;  %p738_p3 = scmp.lt.s32.totalorder (%p324_p1), %s736_s12, %s730_s16 }
  0x71   : >> { %v356_v54 = vmul.f32 %v355_v48, %v350_v43  ;;  %v570_v62 = vld [vmem:[%s1030_s28 + $0x20] sm:$0xff]  ;;  %v347_v5 = vmul.f32 %v345_v47, %v341_v57  ;;  %v357_v7 = vmul.f32 %v355_v48, %v351_v58  ;;  %v379_v10 = vmul.f32 %v571_v59, %v378_v55  ;;  %v575_v14 = vld [vmem:[%s1030_s28 + $0x30] sm:$0xff]  ;;  %v576_v21 = vld [vmem:[%s1030_s28 + $0x38] sm:$0xff] }
  0x72   : >> { %v348_v63 = vadd.f32 %v346_v53, %v336_v52  ;;  %v572_v8 = vld [vmem:[%s1030_s28 + $0x21] sm:$0xff]  ;;  %v370_v12 = vmul.f32 %v570_v62, %v368_v49  ;;  %v389_v13 = vmul.f32 %v573_v3, %v388_v60  ;;  %v577_v20 = vld [vmem:[%s1030_s28 + $0x31] sm:$0xff]  ;;  %v402_v23 = vmul.f32 %v575_v14, %v401_v6  ;;  %v578_v27 = vld [vmem:[%s1030_s28 + $0x39] sm:$0xff]  ;;  %p733_p0 = pneg (%p324_p1), %p732_p12  ;;  %p739_p5 = por (%p324_p1), %p738_p3, %p737_p2 }
  0x73   : >> { %v349_v11 = vadd.f32 %v347_v5, %v337_v4  ;;  %v574_v15 = vld [vmem:[%s1030_s28 + $0x22] sm:$0xff]  ;;  %v380_v19 = vmul.f32 %v572_v8, %v378_v55  ;;  %v579_v26 = vld [vmem:[%s1030_s28 + $0x32] sm:$0xff]  ;;  %v412_v29 = vmul.f32 %v577_v20, %v411_v17  ;;  %v403_v31 = vmul.f32 %v576_v21, %v401_v6  ;;  %v580_v32 = vld [vmem:[%s1030_s28 + $0x3a] sm:$0xff] }
  0x74   : >> { %v358_v9 = vadd.f32 %v356_v54, %v348_v63  ;;  %v390_v25 = vmul.f32 %v574_v15, %v388_v60  ;;  %v422_v34 = vmul.f32 %v986_v2, %v579_v26  ;;  %v413_v36 = vmul.f32 %v578_v27, %v411_v17  ;;  %p740_p7 = pnand (%p324_p1), %p739_p5, %p733_p0 }
  0x75   : >> { %v359_v18 = vadd.f32 %v357_v7, %v349_v11  ;;  %v423_v39 = vmul.f32 %v986_v2, %v580_v32 }
  0x76   : >> { %v371_v16 = vadd.f32 %v369_v0, %v358_v9 }
  0x77   : >> { %v372_v24 = vadd.f32 %v370_v12, %v359_v18 }
  0x78   : >> { %v381_v22 = vadd.f32 %v379_v10, %v371_v16 }
  0x79   : >> { %v382_v30 = vadd.f32 %v380_v19, %v372_v24 }
  0x7a   : >> { %v391_v28 = vadd.f32 %v389_v13, %v381_v22 }
  0x7b   : >> { %v392_v35 = vadd.f32 %v390_v25, %v382_v30 }
  0x7c   : >> { %v404_v33 = vadd.f32 %v402_v23, %v391_v28 }
  0x7d   : >> { %v405_v38 = vadd.f32 %v403_v31, %v392_v35 }
  0x7e   : >> { %v414_v37 = vadd.f32 %v412_v29, %v404_v33 }
  0x7f   : >> { %v415_v41 = vadd.f32 %v413_v36, %v405_v38  ;;  %326 = sbr.rel (!%p324_p1) target bundleno = 104 (0x68), region = 90 }
  0x80   : >> { %v424_v40 = vadd.f32 %v422_v34, %v414_v37 }
  0x81   : >> { %v425_v42 = vadd.f32 %v423_v39, %v415_v41 }
  0x82   : >> { %428 = vst [vmem:[%s427_s24] sm:$0xff] %v424_v40 }
  0x83   : >> { %429 = vst [vmem:[%s427_s24 + $0x8] sm:$0xff] %v425_v42 }
  0x84   : > { %743 = shalt.err (!%p740_p7)
}
  0x85   : > { %s744_s8 = scalar_lea.hbm %s1069_s30, 4096  ;;  %s748_s19 = scalar_lea.hbm %s1122_s2, 8192 }
  0x86   : > { %p745_p4 = scmp.ne.s32.totalorder %s1069_s30, %s744_s8  ;;  %p749_p11 = scmp.lt.s32.totalorder %s1069_s30, %s1122_s2 }
  0x87   : > { %p750_p10 = scmp.lt.s32.totalorder %s748_s19, %s744_s8 }
  0x88   : > { %p746_p6 = pnand %p745_p4, %p937_p13 }
  0x89   : > { %p751_p1 = por %p750_p10, %p749_p11 }
  0x8a   : > { %p747_p9 = pneg %p746_p6 }
  0x8c   : > { %p752_p8 = pnand %p751_p1, %p747_p9 }
  0x8e   : > { %755 = shalt.err (!%p752_p8)
}
  0x8f   : > { %s830_s23 = smov 128   ;;  %s831_s24 = smov 8  }
  0x90   : > { %596 = dma.vmem_to_hbm [thread:$0]  (%p937_p13), %s1072_s6, 4096, %s1069_s30, %s431_s3, %s830_s23, %s830_s23, %s831_s24  }
  0x91 PF: > { %s460_s26 = sand.u32 1, %s798_s9   ;;  %p1136_p12 = scmp.ne.s32.totalorder %s1128_s20, 0 }
  0x92   : > { %p1137_p0 = scmp.ge.s32.totalorder %s818_s14, 2  ;;  %s461_s29 = scalar_lea.sflag [#allocation5], %s460_s26 }
  0x94   : > { %p607_p2 = pnand %p1137_p0, %p1136_p12 }
  0x96   : > { %p608_p3 = pneg %p607_p2 }
  0x98   : > { %793 = dma.done.wait (%p608_p3), %s461_s29, 4096  }
  0x99   : > { %795 = vsyncadd (%p608_p3), %s461_s29, 4294963200  ;;  %s19_s14 = sadd.s32 1, %s818_s14   ;;  %s1138_s9 = smov %s802_s10 }
  0x9a   : > { %p16_p5 = scmp.ge.s32.totalorder %s19_s14, 4   ;;  %s1139_s10 = smov %s806_s11 }
  0x9b   : > { %s1140_s11 = smov %s946_s15  ;;  %s1141_s12 = smov %s814_s13 }
  0x9c   : > { %s1142_s13 = smov %s1144_s25  ;;  %18 = sbr.rel (!%p16_p5) target bundleno = 7 (0x7), region = 101 }
  0xa1   :  { %466 = vsyncpa [#allocation4], 1 }
  0xa2   :  { %468 = vsyncpa [#allocation4 + $0x1], 1 }
  0xa3   :  { %469 = vsyncpa [#allocation7], 1 }
  0xa4   :  { %470 = vsyncpa [#allocation5], 1 }
  0xa5   :  { %472 = vsyncpa [#allocation5 + $0x1], 1 }

</bundles_post_ra>
